<compile_context>
chip_gen: v7x
topology: tpu7x:2x2x1
jax: 0.10.0
libtpu: 0.0.40
codegen_flags: <defaults>
</compile_context>

<pallas_src>
import math
import functools

import jax
import jax.numpy as jnp
from jax.experimental import pallas as pl
from jax.experimental.pallas import tpu as pltpu


# ----------------------------------------------------------------------------
# Parameter setup (matches PyTorch __init__ exactly, deterministic)
# ----------------------------------------------------------------------------
def make_positional_encoding(d_model: int, max_len: int = 5000) -> jnp.ndarray:
    position = jnp.arange(max_len, dtype=jnp.float32)[:, None]            # (max_len, 1)
    div_term = jnp.exp(
        jnp.arange(0, d_model, 2, dtype=jnp.float32)
        * (-math.log(10000.0) / d_model)
    )                                                                     # (d_model/2,)
    pe = jnp.zeros((max_len, d_model), dtype=jnp.float32)
    pe = pe.at[:, 0::2].set(jnp.sin(position * div_term))
    pe = pe.at[:, 1::2].set(jnp.cos(position * div_term))
    return pe                                                             # (max_len, d_model)


def _dropout_threshold(p: float) -> int:
    # drop iff bits < p * 2^32 (clamped; saturates just below 1.0 as p -> 1).
    return min(int(round(p * 4294967296.0)), 0xFFFFFFFF)


# ----------------------------------------------------------------------------
# Pallas kernels (blocks: x/out/bits (1, tR, L), pe (tR, L))
# ----------------------------------------------------------------------------
def _add_pe_kernel(x_ref, pe_ref, o_ref):
    o_ref[0] = (x_ref[0] + pe_ref[...]).astype(o_ref.dtype)


def _add_pe_dropout_kernel(x_ref, pe_ref, bits_ref, o_ref, *, thresh, inv_keep):
    y = x_ref[0] + pe_ref[...]
    keep = bits_ref[0] >= jnp.uint32(thresh)
    scale = jnp.asarray(inv_keep, dtype=y.dtype)
    o_ref[0] = jnp.where(keep, y * scale, jnp.zeros((), y.dtype)).astype(o_ref.dtype)


def _choose_tile_rows(rows: int, lanes: int, itemsize: int,
                      target_bytes: int = 1 << 20) -> int:
    """Pick a row-tile: ~1 MiB per buffer, multiple of 8, or the full extent."""
    if rows <= 8:
        return rows
    per_row = lanes * itemsize
    t = (target_bytes // per_row) // 8 * 8
    t = max(8, min(rows, int(t)))
    return rows if t >= rows else t


# ----------------------------------------------------------------------------
# Wrapper
# ----------------------------------------------------------------------------
@functools.partial(jax.jit, static_argnames=("p", "training"))
def positional_encoder(x, pe, key=None, *, p: float = 0.1, training: bool = False):
    """x: (B, S, D); pe: full (max_len, D) table; key: jax PRNG key (train only)."""
    B, S, D = x.shape
    pe_slice = pe[:S].astype(x.dtype)                     # mirrors self.pe[:x.size(1)]

    apply_dropout = training and p > 0.0
    if apply_dropout and p >= 1.0:                        # degenerate case: drop all
        return jnp.zeros_like(x)

    # Lane-dense 2D view per batch element when possible (D may be < 128).
    if (S * D) % 128 == 0:
        rows, lanes = (S * D) // 128, 128
    else:
        rows, lanes = S, D
    x2 = x.reshape(B, rows, lanes)
    pe2 = pe_slice.reshape(rows, lanes)

    tile_rows = _choose_tile_rows(rows, lanes, x.dtype.itemsize)
    num_r = pl.cdiv(rows, tile_rows)

    x_spec = pl.BlockSpec((1, tile_rows, lanes), lambda r, b: (b, r, 0))
    pe_spec = pl.BlockSpec((tile_rows, lanes), lambda r, b: (r, 0))   # invariant over b
    out_spec = pl.BlockSpec((1, tile_rows, lanes), lambda r, b: (b, r, 0))

    if apply_dropout:
        if key is None:
            key = jax.random.PRNGKey(0)
        bits = jax.random.bits(key, (B, S, D), dtype=jnp.uint32).reshape(B, rows, lanes)
        kernel = functools.partial(
            _add_pe_dropout_kernel,
            thresh=_dropout_threshold(p),
            inv_keep=1.0 / (1.0 - p),
        )
        in_specs = [x_spec, pe_spec, x_spec]
        args = (x2, pe2, bits)
    else:
        kernel = _add_pe_kernel
        in_specs = [x_spec, pe_spec]
        args = (x2, pe2)

    out2 = pl.pallas_call(
        kernel,
        out_shape=jax.ShapeDtypeStruct((B, rows, lanes), x.dtype),
        grid_spec=pltpu.PrefetchScalarGridSpec(
            num_scalar_prefetch=0,
            grid=(num_r, B),            # batch innermost -> pe tile fetched once per r
            in_specs=in_specs,
            out_specs=out_spec,
        ),
        compiler_params=pltpu.CompilerParams(
            dimension_semantics=("parallel", "arbitrary"),
        ),
    )(*args)

    return out2.reshape(B, S, D)


# ----------------------------------------------------------------------------
# Driver
# ----------------------------------------------------------------------------
if __name__ == "__main__":
    B, S, D = 2, 8, 32
    MAX_LEN = 5000

    key = jax.random.PRNGKey(0)
    kx, kd = jax.random.split(key)
    x = jax.random.normal(kx, (B, S, D), dtype=jnp.float32)
    pe = make_positional_encoding(D, MAX_LEN)

    # Eval mode (dropout is identity) — deterministic, check against reference.
    out_eval = jax.block_until_ready(positional_encoder(x, pe, p=0.1, training=False))
    ref_eval = x + pe[:S][None, :, :]
    assert out_eval.shape == (B, S, D)
    assert jnp.allclose(out_eval, ref_eval, atol=1e-6, rtol=1e-6)

    # Train mode: inverted dropout; bits are host-visible, so check exactly.
    p = 0.1
    out_train = jax.block_until_ready(positional_encoder(x, pe, kd, p=p, training=True))
    bits = jax.random.bits(kd, (B, S, D), dtype=jnp.uint32)
    keep = bits >= jnp.uint32(_dropout_threshold(p))
    ref_train = jnp.where(keep, ref_eval * jnp.float32(1.0 / (1.0 - p)), 0.0)
    assert out_train.shape == (B, S, D)
    assert jnp.allclose(out_train, ref_train, atol=1e-6, rtol=1e-6)

    print("KERNEL_OK")
</pallas_src>

<mosaic_0001>
module attributes {stable_mosaic.version = 11 : i64} {
  func.func @_add_pe_kernel(%arg0: i32, %arg1: i32, %arg2: memref<1x2x128xf32, #tpu.memory_space<vmem>>, %arg3: memref<2x128xf32, #tpu.memory_space<vmem>>, %arg4: memref<1x2x128xf32, #tpu.memory_space<vmem>>) attributes {dimension_semantics = [#tpu.dimension_semantics<parallel>, #tpu.dimension_semantics<arbitrary>], iteration_bounds = array<i64: 1, 2>, scalar_prefetch = 0 : i64, scratch_operands = 0 : i64, tpu.core_type = #tpu.core_type<tc>, window_params = [{transform_indices = @transform_0, window_bounds = array<i64: 1, 2, 128>}, {transform_indices = @transform_1, window_bounds = array<i64: 2, 128>}, {transform_indices = @transform_2, window_bounds = array<i64: 1, 2, 128>}]} {
    %c0 = arith.constant 0 : index
    %c0_0 = arith.constant 0 : index
    %c0_1 = arith.constant 0 : index
    %0 = vector.load %arg2[%c0, %c0_0, %c0_1] : memref<1x2x128xf32, #tpu.memory_space<vmem>>, vector<1x2x128xf32>
    %1 = vector.shape_cast %0 : vector<1x2x128xf32> to vector<2x128xf32>
    %c0_2 = arith.constant 0 : index
    %c0_3 = arith.constant 0 : index
    %2 = vector.load %arg3[%c0_2, %c0_3] : memref<2x128xf32, #tpu.memory_space<vmem>>, vector<2x128xf32>
    %3 = arith.addf %1, %2 : vector<2x128xf32>
    %c0_4 = arith.constant 0 : index
    %c0_5 = arith.constant 0 : index
    %c0_6 = arith.constant 0 : index
    %4 = vector.load %arg4[%c0_4, %c0_5, %c0_6] : memref<1x2x128xf32, #tpu.memory_space<vmem>>, vector<1x2x128xf32>
    %5 = vector.shape_cast %4 : vector<1x2x128xf32> to vector<2x128xf32>
    %6 = vector.shape_cast %3 : vector<2x128xf32> to vector<1x2x128xf32>
    tpu.vector_store %arg4[%c0_4, %c0_5, %c0_6], %6 {strides = array<i32>} : memref<1x2x128xf32, #tpu.memory_space<vmem>>, vector<1x2x128xf32>,
    return
  }
  func.func @transform_0(%arg0: i32, %arg1: i32) -> (i32, i32, i32) {
    %c0_i32 = arith.constant 0 : i32
    %c0_i32_0 = arith.constant 0 : i32
    return %arg1, %arg0, %c0_i32 : i32, i32, i32
  }
  func.func @transform_1(%arg0: i32, %arg1: i32) -> (i32, i32) {
    %c0_i32 = arith.constant 0 : i32
    %c0_i32_0 = arith.constant 0 : i32
    return %arg0, %c0_i32 : i32, i32
  }
  func.func @transform_2(%arg0: i32, %arg1: i32) -> (i32, i32, i32) {
    %c0_i32 = arith.constant 0 : i32
    %c0_i32_0 = arith.constant 0 : i32
    return %arg1, %arg0, %c0_i32 : i32, i32, i32
  }
}

</mosaic_0001>

<bundles_post_ra>
// kernel: positional_encoder.1
= control target key start
LH: loop header
LB: loop body
LE: loop exit
PB: predicated region body
PF: predicated region fallthrough
CT: control target
= control target key end

     0   :  { %s354_s9 = smov 0   ;;  %s331_s10 = smov 0   ;;  %s368_s0 = inlined_call_operand.vmem [shape: f32[2,2,128], index: 0, kind: input, shape index: {}]   ;;  %s369_s1 = inlined_call_operand.vmem [shape: f32[2,128], index: 1, kind: input, shape index: {}]   ;;  %s370_s2 = inlined_call_operand.vmem [shape: f32[2,2,128], index: 2, kind: output, shape index: {}]  }
   0x1   :  { %s335_s11 = smov 0  }
   0x2 LB: > { %s21_s12 = sadd.s32 1, %s333_s10  ;;  %p286_p0 = scmp.ge.s32.totalorder %s337_s11, 1  ;;  %s337_s11 = sphi %s335_s11, %s12_s11   ;;  %s333_s10 = sphi %s331_s10, %s332_s10   ;;  %s329_s9 = sphi %s354_s9, %s371_s9  }
   0x3   : > { %p22_p1 = scmp.ge.s32.totalorder %s21_s12, 2  ;;  %p139_p2 = scmp.lt.s32.totalorder %s337_s11, 3 }
   0x5   : > { %s373_s12 = smov (%p22_p1, %s21_s12), 0  ;;  %p140_p3 = pnand %p286_p0, %p139_p2 }
   0x6   : > { %p169_p4 = scmp.lt.s32.totalorder (!%p140_p3), %s329_s9, 1  ;;  %v188_v0 = vld [vmem:[%s369_s1] sm:$0x3] (!%p140_p3) }
   0x7   : > { %143 = sbr.rel (%p140_p3) target bundleno = 21 (0x15), region = 28 }
   0xe   : > { %s375_s9 = smov (!%p169_p4, %s329_s9), 1 }
   0xf   : > { %s287_s13 = sshll.u32 %s375_s9, 1 }
  0x10   : > { %s175_s18 = scalar_lea.vmem %s368_s0, %s287_s13  ;;  %s186_s21 = scalar_lea.vmem %s370_s2, %s287_s13 }
  0x11   : > { %v187_v1 = vld [vmem:[%s175_s18] sm:$0x3] }
  0x12   : > { %v189_v2 = vadd.f32 %v188_v0, %v187_v1 }
  0x14   : > { %190 = vst [vmem:[%s186_s21] sm:$0x3] %v189_v2 }
  0x15 PF: > { %s12_s11 = sadd.s32 1, %s337_s11   ;;  %s371_s9 = smov %s333_s10 }
  0x16   : > { %p9_p5 = scmp.ge.s32.totalorder %s12_s11, 4   ;;  %s332_s10 = smov %s373_s12  }
  0x18   :  { %11 = sbr.rel (!%p9_p5) target bundleno = 2 (0x2), region = 61 }

</bundles_post_ra>
